<compile_context>
chip_gen: v7x
topology: tpu7x:2x2x1
jax: 0.10.0
libtpu: 0.0.40
codegen_flags: <defaults>
</compile_context>

<pallas_src>
import math
import jax
import jax.numpy as jnp
from jax.experimental import pallas as pl
from jax.experimental.pallas import tpu as pltpu


_TARGET_BLOCK_BYTES = 4 << 20   # ~4 MiB per block; double-buffered x/pe/out stays ~24 MiB
_VMEM_LIMIT_BYTES = 64 << 20    # explicit scoped-VMEM cap (fits v7x 64 MiB physical)


def _round_up(x: int, m: int) -> int:
    return ((x + m - 1) // m) * m


def _pick_rows(rows_total: int, padded_row_bytes: int) -> int:
    """Rows per block: a multiple of 8 (sublane granularity) sized to ~_TARGET_BLOCK_BYTES,
    capped at the full extent (a full-dim block is always legal)."""
    target = max(1, _TARGET_BLOCK_BYTES // max(1, padded_row_bytes))
    rb = max(8, (target // 8) * 8)
    return min(rb, rows_total)


def _build_pe_table(d_model: int, max_len: int = 5000) -> jnp.ndarray:
    """Deterministic sin/cos positional-encoding table, identical to the PyTorch __init__."""
    position = jnp.arange(0, max_len, dtype=jnp.float32)[:, None]            # (max_len, 1)
    div_term = jnp.exp(
        jnp.arange(0, d_model, 2, dtype=jnp.float32) * (-math.log(10000.0) / d_model)
    )                                                                         # (ceil(d/2),)
    angles = position * div_term                                              # (max_len, ceil(d/2))
    pe = jnp.zeros((max_len, d_model), dtype=jnp.float32)
    pe = pe.at[:, 0::2].set(jnp.sin(angles))
    pe = pe.at[:, 1::2].set(jnp.cos(angles)[:, : d_model // 2])
    return pe                                                                 # (max_len, d_model)


# ----------------------------- kernels -----------------------------

def _pe_add_batched_kernel(x_ref, pe_ref, o_ref):
    # x_ref/o_ref: (bb, rows, C) block spanning bb batch elements;
    # pe_ref: (rows, C) broadcast over the leading batch dim -> one VPU add.
    o_ref[...] = x_ref[...] + pe_ref[...]


def _pe_add_bf_kernel(x_ref, pe_ref, o_ref):
    # batch_first tiled path: x_ref/o_ref are (1, RB, C) blocks of one batch
    # element, pe_ref is the matching (RB, C) slice.  Indexing the leading dim
    # away keeps the body a single clean 2-D VPU add.
    o_ref[0] = x_ref[0] + pe_ref[...]


def _pe_add_sf_kernel(x_ref, pe_ref, o_ref):
    # seq_first: x_ref/o_ref are (TS, B, D); pe_ref is (TS, 1, D) broadcast
    # over the size-1 batch dim -> plain elementwise VPU add.
    o_ref[...] = x_ref[...] + pe_ref[...]


# ----------------------------- wrappers -----------------------------

def _forward_batch_first(x, pe_table):
    """x: (B, S, D) -> x + pe[:S] broadcast over batch."""
    B, S, D = x.shape
    pe = pe_table[:S, :].astype(x.dtype)

    # Lane-dense re-view: fold `u` consecutive seq positions into the lane dim
    # so the block minor dim is a multiple of 128 even when d_model < 128.
    # This reshape is free (memory is contiguous, row-major).
    u = 128 // math.gcd(D, 128)
    if u > 1 and S % u != 0:
        u = 1                      # fallback: keep (S, D); compiler lane-masks D
    rows, C = S // u, u * D
    x3 = x.reshape(B, rows, C)
    pe2 = pe.reshape(rows, C)

    itemsize = jnp.dtype(x.dtype).itemsize
    row_bytes = _round_up(C, 128) * itemsize
    slab_bytes = _round_up(rows, 8) * row_bytes      # padded per-batch (rows, C) slab

    if slab_bytes <= _TARGET_BLOCK_BYTES:
        # One batch element's whole slab fits a block: tile over batch only.
        # Single 1-D grid, full-extent (rows, C) minor dims (always legal), PE
        # fetched once and reused for every batch element in the block.
        bb = max(1, min(B, _TARGET_BLOCK_BYTES // max(1, slab_bytes)))
        out = pl.pallas_call(
            _pe_add_batched_kernel,
            out_shape=jax.ShapeDtypeStruct((B, rows, C), x.dtype),
            grid_spec=pltpu.PrefetchScalarGridSpec(
                num_scalar_prefetch=0,
                grid=(pl.cdiv(B, bb),),
                in_specs=[
                    pl.BlockSpec((bb, rows, C), lambda b: (b, 0, 0)),
                    pl.BlockSpec((rows, C), lambda b: (0, 0)),
                ],
                out_specs=pl.BlockSpec((bb, rows, C), lambda b: (b, 0, 0)),
            ),
            compiler_params=pltpu.CompilerParams(
                dimension_semantics=("parallel",),
                vmem_limit_bytes=_VMEM_LIMIT_BYTES,
            ),
        )(x3, pe2)
        return out.reshape(B, S, D)

    # Large-S path: tile the seq axis.  Seq-tile axis OUTER, batch INNER: the
    # PE block index (r, 0) is constant across the inner batch loop, so Pallas
    # skips re-fetching the PE tile per batch element.
    rb = _pick_rows(rows, row_bytes)
    grid = (pl.cdiv(rows, rb), B)
    out = pl.pallas_call(
        _pe_add_bf_kernel,
        out_shape=jax.ShapeDtypeStruct((B, rows, C), x.dtype),
        grid_spec=pltpu.PrefetchScalarGridSpec(
            num_scalar_prefetch=0,
            grid=grid,
            in_specs=[
                pl.BlockSpec((1, rb, C), lambda r, b: (b, r, 0)),
                pl.BlockSpec((rb, C), lambda r, b: (r, 0)),
            ],
            out_specs=pl.BlockSpec((1, rb, C), lambda r, b: (b, r, 0)),
        ),
        compiler_params=pltpu.CompilerParams(
            # Pure elementwise op -> both axes parallel; the 2-D grid gives
            # v7x's two TensorCores something to split even when B == 1.
            dimension_semantics=("parallel", "parallel"),
            vmem_limit_bytes=_VMEM_LIMIT_BYTES,
        ),
    )(x3, pe2)
    return out.reshape(B, S, D)


def _forward_seq_first(x, pe_table):
    """x: (S, B, D) handled natively -- no wrapper transposes."""
    S, B, D = x.shape
    pe = pe_table[:S, :].astype(x.dtype).reshape(S, 1, D)

    itemsize = jnp.dtype(x.dtype).itemsize
    # Padded row bytes account for (sublane, lane) tile padding of the (B, D) minor dims.
    ts = _pick_rows(S, _round_up(B, 8) * _round_up(D, 128) * itemsize)
    grid = (pl.cdiv(S, ts),)

    return pl.pallas_call(
        _pe_add_sf_kernel,
        out_shape=jax.ShapeDtypeStruct((S, B, D), x.dtype),
        grid_spec=pltpu.PrefetchScalarGridSpec(
            num_scalar_prefetch=0,
            grid=grid,
            in_specs=[
                pl.BlockSpec((ts, B, D), lambda s: (s, 0, 0)),
                pl.BlockSpec((ts, 1, D), lambda s: (s, 0, 0)),
            ],
            out_specs=pl.BlockSpec((ts, B, D), lambda s: (s, 0, 0)),
        ),
        compiler_params=pltpu.CompilerParams(
            dimension_semantics=("parallel",),
            vmem_limit_bytes=_VMEM_LIMIT_BYTES,
        ),
    )(x, pe)


def positional_encoding_forward(x, pe_table, batch_first: bool = True):
    """Equivalent of PositionalEncoding.forward.

    x: (B, S, D) if batch_first else (S, B, D); pe_table: (max_len, D).
    """
    if batch_first:
        return _forward_batch_first(x, pe_table)
    return _forward_seq_first(x, pe_table)


if __name__ == "__main__":
    key = jax.random.PRNGKey(0)
    B, S, D = 2, 8, 32
    MAX_LEN = 64

    pe_table = _build_pe_table(d_model=D, max_len=MAX_LEN)

    # batch_first=True path
    x_bf = jax.random.normal(key, (B, S, D), dtype=jnp.float32)
    out_bf = jax.block_until_ready(positional_encoding_forward(x_bf, pe_table, batch_first=True))
    ref_bf = x_bf + pe_table[None, :S, :]
    assert jnp.allclose(out_bf, ref_bf, atol=1e-6), "batch_first=True mismatch"

    # batch_first=False path (handled natively, no transposes inside the wrapper)
    x_sf = jnp.transpose(x_bf, (1, 0, 2))  # (S, B, D) test input
    out_sf = jax.block_until_ready(positional_encoding_forward(x_sf, pe_table, batch_first=False))
    ref_sf = x_sf + pe_table[:S, None, :]
    assert jnp.allclose(out_sf, ref_sf, atol=1e-6), "batch_first=False mismatch"

    print("KERNEL_OK")
</pallas_src>

<mosaic_0001>
module attributes {stable_mosaic.version = 11 : i64} {
  func.func @_pe_add_batched_kernel(%arg0: i32, %arg1: memref<2x2x128xf32, #tpu.memory_space<vmem>>, %arg2: memref<2x128xf32, #tpu.memory_space<vmem>>, %arg3: memref<2x2x128xf32, #tpu.memory_space<vmem>>) attributes {dimension_semantics = [#tpu.dimension_semantics<parallel>], iteration_bounds = array<i64: 1>, scalar_prefetch = 0 : i64, scratch_operands = 0 : i64, tpu.core_type = #tpu.core_type<tc>, window_params = [{transform_indices = @transform_0, window_bounds = array<i64: 2, 2, 128>}, {pipeline_mode = #tpu.pipeline_mode<synchronous>, transform_indices = @transform_1, window_bounds = array<i64: 2, 128>}, {transform_indices = @transform_2, window_bounds = array<i64: 2, 2, 128>}]} {
    %c0 = arith.constant 0 : index
    %c0_0 = arith.constant 0 : index
    %c0_1 = arith.constant 0 : index
    %0 = vector.load %arg1[%c0, %c0_0, %c0_1] : memref<2x2x128xf32, #tpu.memory_space<vmem>>, vector<2x2x128xf32>
    %c0_2 = arith.constant 0 : index
    %c0_3 = arith.constant 0 : index
    %1 = vector.load %arg2[%c0_2, %c0_3] : memref<2x128xf32, #tpu.memory_space<vmem>>, vector<2x128xf32>
    %2 = vector.shape_cast %1 : vector<2x128xf32> to vector<1x2x128xf32>
    %3 = vector.broadcast %2 : vector<1x2x128xf32> to vector<2x2x128xf32>
    %4 = arith.addf %0, %3 : vector<2x2x128xf32>
    %c0_4 = arith.constant 0 : index
    %c0_5 = arith.constant 0 : index
    %c0_6 = arith.constant 0 : index
    %5 = vector.load %arg3[%c0_4, %c0_5, %c0_6] : memref<2x2x128xf32, #tpu.memory_space<vmem>>, vector<2x2x128xf32>
    tpu.vector_store %arg3[%c0_4, %c0_5, %c0_6], %4 {strides = array<i32>} : memref<2x2x128xf32, #tpu.memory_space<vmem>>, vector<2x2x128xf32>,
    return
  }
  func.func @transform_0(%arg0: i32) -> (i32, i32, i32) {
    %c0_i32 = arith.constant 0 : i32
    %c0_i32_0 = arith.constant 0 : i32
    %c0_i32_1 = arith.constant 0 : i32
    return %arg0, %c0_i32, %c0_i32_0 : i32, i32, i32
  }
  func.func @transform_1(%arg0: i32) -> (i32, i32) {
    %c0_i32 = arith.constant 0 : i32
    %c0_i32_0 = arith.constant 0 : i32
    %c0_i32_1 = arith.constant 0 : i32
    return %c0_i32, %c0_i32_0 : i32, i32
  }
  func.func @transform_2(%arg0: i32) -> (i32, i32, i32) {
    %c0_i32 = arith.constant 0 : i32
    %c0_i32_0 = arith.constant 0 : i32
    %c0_i32_1 = arith.constant 0 : i32
    return %arg0, %c0_i32, %c0_i32_0 : i32, i32, i32
  }
}

</mosaic_0001>

<bundles_post_ra>
// kernel: tpu_custom_call.1
= control target key start
LH: loop header
LB: loop body
LE: loop exit
PB: predicated region body
PF: predicated region fallthrough
CT: control target
= control target key end

     0   :  { %7 = vsyncpa [#allocation3], 0  ;;  %s202_s0 = inlined_call_operand.hbm [shape: f32[2,2,128], index: 0, kind: input, shape index: {}]   ;;  %s203_s1 = inlined_call_operand.hbm [shape: f32[2,128], index: 1, kind: input, shape index: {}]   ;;  %s204_s2 = inlined_call_operand.hbm [shape: f32[2,2,128], index: 2, kind: output, shape index: {}]  }
   0x1   :  { %8 = vsyncpa [#allocation6], 0 }
   0x2   :  { %9 = vsyncpa [#allocation4], 0  ;;  %s140_s9 = smov [#allocation2]   ;;  %s68_s13 = scalar_lea.hbm %s202_s0, 64 }
   0x3   :  { %s15_s10 = sshll.u32 %s140_s9, 4  ;;  %p69_p0 = scmp.ne.s32.totalorder %s202_s0, %s68_s13  ;;  %s16_s10 = int_to_ptr.vmem [resolvable:$true] %s15_s10 }
   0x4   :  { %p72_p1 = scmp.lt.u32.totalorder %s68_s13, %s202_s0 }
   0x6   :  { %p74_p2 = pnand %p72_p1, %p69_p0 }
   0x8   :  { %77 = shalt.err (!%p74_p2)
}
   0x9   :  { %s78_s18 = scalar_lea.vmem %s16_s10, 64  ;;  %p83_p4 = scmp.lt.s32.totalorder %s16_s10, %s16_s10 }
   0xa   :  { %p79_p3 = scmp.ne.s32.totalorder %s16_s10, %s78_s18  ;;  %p84_p5 = scmp.lt.s32.totalorder %s78_s18, %s78_s18 }
   0xc   :  { %p85_p6 = por %p84_p5, %p83_p4 }
   0xe   :  { %p86_p7 = pnand %p85_p6, %p79_p3 }
  0x10   :  { %89 = shalt.err (!%p86_p7)
}
  0x11   :  { %s141_s19 = smov 32   ;;  %s142_s20 = smov 2  }
  0x12   :  { %21 = dma.hbm_to_vmem [thread:$0]  %s202_s0, 64, %s16_s10, [#allocation3], %s141_s19, %s141_s19, %s142_s20  }
  0x13   :  { %s143_s23 = smov [#allocation5]   ;;  %s90_s27 = scalar_lea.hbm %s203_s1, 32 }
  0x14   :  { %s28_s24 = sshll.u32 %s143_s23, 4  ;;  %p91_p8 = scmp.ne.s32.totalorder %s203_s1, %s90_s27  ;;  %s29_s24 = int_to_ptr.vmem [resolvable:$true] %s28_s24 }
  0x15   :  { %p94_p9 = scmp.lt.u32.totalorder %s90_s27, %s203_s1 }
  0x17   :  { %p96_p10 = pnand %p94_p9, %p91_p8 }
  0x19   :  { %99 = shalt.err (!%p96_p10)
}
  0x1a   :  { %s100_s4 = scalar_lea.vmem %s29_s24, 32  ;;  %p105_p12 = scmp.lt.s32.totalorder %s29_s24, %s29_s24 }
  0x1b   :  { %p101_p11 = scmp.ne.s32.totalorder %s29_s24, %s100_s4  ;;  %p106_p13 = scmp.lt.s32.totalorder %s100_s4, %s100_s4 }
  0x1d   :  { %p107_p0 = por %p106_p13, %p105_p12 }
  0x1f   :  { %p108_p1 = pnand %p107_p0, %p101_p11 }
  0x21   :  { %111 = shalt.err (!%p108_p1)
}
  0x22   :  { %31 = dma.hbm_to_vmem [thread:$0]  %s203_s1, 32, %s29_s24, [#allocation6]  }
  0x23   :  { %134 = dma.done.wait [#allocation3], 64  }
  0x24   :  { %135 = vsyncadd [#allocation3], 4294967232 }
  0x25   :  { %136 = dma.done.wait [#allocation6], 32  }
  0x26   :  { %137 = vsyncadd [#allocation6], 4294967264  ;;  %s144_s6 = smov [#allocation7]   ;;  %v38_v0 = vld [vmem:[#allocation2] sm:$0x3] }
  0x27   :  { %s50_s7 = sshll.u32 %s144_s6, 4  ;;  %v40_v1 = vld [vmem:[#allocation5] sm:$0x3]  ;;  %v39_v2 = vld [vmem:[#allocation2 + $0x2] sm:$0x3]  ;;  %s51_s7 = int_to_ptr.vmem [resolvable:$true] %s50_s7 }
  0x28   :  { %v41_v3 = vadd.f32 %v40_v1, %v38_v0  ;;  %v42_v4 = vadd.f32 %v40_v1, %v39_v2  ;;  %s112_s8 = scalar_lea.vmem %s51_s7, 64  ;;  %p117_p3 = scmp.lt.s32.totalorder %s51_s7, %s51_s7 }
  0x29   :  { %p113_p2 = scmp.ne.s32.totalorder %s51_s7, %s112_s8  ;;  %p118_p4 = scmp.lt.s32.totalorder %s112_s8, %s112_s8 }
  0x2a   :  { %43 = vst [vmem:[#allocation7] sm:$0x3] %v41_v3  ;;  %44 = vst [vmem:[#allocation7 + $0x2] sm:$0x3] %v42_v4 }
  0x2b   :  { %p119_p5 = por %p118_p4, %p117_p3 }
  0x2d   :  { %p120_p6 = pnand %p119_p5, %p113_p2 }
  0x2f   :  { %123 = shalt.err (!%p120_p6)
}
  0x30   :  { %s124_s10 = scalar_lea.hbm %s204_s2, 64 }
  0x31   :  { %p125_p7 = scmp.ne.s32.totalorder %s204_s2, %s124_s10  ;;  %p128_p8 = scmp.lt.u32.totalorder %s124_s10, %s204_s2 }
  0x33   :  { %p130_p9 = pnand %p128_p8, %p125_p7 }
  0x35   :  { %133 = shalt.err (!%p130_p9)
}
  0x36   :  { %56 = dma.vmem_to_hbm [thread:$0]  %s51_s7, 64, %s204_s2, [#allocation4], %s141_s19, %s141_s19, %s142_s20  }
  0x37   :  { %138 = dma.done.wait [#allocation4], 64  }
  0x38   :  { %139 = vsyncadd [#allocation4], 4294967232 }
  0x39   :  { %60 = vsyncpa [#allocation3], 1 }
  0x3a   :  { %61 = vsyncpa [#allocation6], 1 }
  0x3b   :  { %62 = vsyncpa [#allocation4], 1 }

</bundles_post_ra>
